<compile_context>
chip_gen: v5e
topology: v5e:2x2
jax: 0.10.0
libtpu: 0.0.40
codegen_flags: <defaults>
</compile_context>

<pallas_src>
import jax
import jax.numpy as jnp
from jax.experimental import pallas as pl
from jax.experimental.pallas import tpu as pltpu

_LANE = 128
_SUBLANE = 8


def _round_up(x, m):
    return ((x + m - 1) // m) * m


def _classifier_kernel(x_ref, w_ref, b_ref, o_ref):
    # x_ref: [TB, H], w_ref: [H, Cpad], b_ref: [1, Cpad], o_ref: [TB, Cpad]
    acc = jnp.dot(x_ref[...], w_ref[...], preferred_element_type=jnp.float32)
    o_ref[...] = (acc + b_ref[...].astype(jnp.float32)).astype(o_ref.dtype)


def prepare_classifier_params(weight, bias=None, *, param_dtype=jnp.bfloat16):
    """One-time (init-time) repack of nn.Linear params.

    weight: [C, H] (PyTorch nn.Linear layout) -> [H, Cpad], lane-dense classes,
            stored in `param_dtype` (bf16 by default: halves HBM weight bytes,
            MXU still accumulates in f32).
    bias:   [C] or None                       -> [1, Cpad] in `param_dtype`.
    """
    C, H = weight.shape
    c_pad = _round_up(C, _LANE)
    w_t = (jnp.zeros((H, c_pad), dtype=param_dtype)
           .at[:, :C].set(weight.T.astype(param_dtype)))
    if bias is None:
        b2 = jnp.zeros((1, c_pad), dtype=param_dtype)
    else:
        b2 = (jnp.zeros((1, c_pad), dtype=param_dtype)
              .at[:, :C].set(bias.reshape(1, C).astype(param_dtype)))
    return w_t, b2


def bert_classifier_head(pooled_output, w_t, b2, num_classes, *,
                         block_b=256, trim_classes=True):
    """pooled_output: [B, H]; w_t: [H, Cpad]; b2: [1, Cpad]
    (from prepare_classifier_params)."""
    B, H = pooled_output.shape
    c_pad = w_t.shape[1]
    assert c_pad % _LANE == 0 and c_pad >= num_classes

    x_itemsize = jnp.dtype(pooled_output.dtype).itemsize
    # dtype-aware packed-sublane multiple: 8 (f32), 16 (bf16), 32 (int8/fp8)
    sub = _SUBLANE * max(1, 4 // x_itemsize)
    b_pad = _round_up(B, sub)

    # Batch tile: capped at block_b (~128-256 rows keeps the ~0.35us/step
    # overhead amortized while leaving several steps for DMA/compute overlap),
    # and split into >=2 tiles whenever B permits so both v7x TensorCores
    # (dimension_semantics="parallel") stream half the batch each.
    tb = min(block_b, b_pad)
    if b_pad >= 2 * sub and pl.cdiv(b_pad, tb) < 2:
        tb = _round_up(pl.cdiv(b_pad, 2), sub)
    grid_b = pl.cdiv(B, tb)

    # Accurate advisory cost: the MXU really does 2*B*H*c_pad FLOPs, and each
    # operand contributes with its own itemsize.
    cost = pl.CostEstimate(
        flops=2 * B * H * c_pad,
        transcendentals=0,
        bytes_accessed=(B * H * x_itemsize
                        + H * c_pad * jnp.dtype(w_t.dtype).itemsize
                        + c_pad * jnp.dtype(b2.dtype).itemsize
                        + B * c_pad * x_itemsize),
    )

    out_padded = pl.pallas_call(
        _classifier_kernel,
        out_shape=jax.ShapeDtypeStruct((B, c_pad), pooled_output.dtype),
        grid=(grid_b,),
        in_specs=[
            pl.BlockSpec((tb, H), lambda i: (i, 0)),        # batch tile (pipelined)
            pl.BlockSpec((H, c_pad), lambda i: (0, 0)),     # weight, VMEM-resident
            pl.BlockSpec((1, c_pad), lambda i: (0, 0)),     # bias, VMEM-resident
        ],
        out_specs=pl.BlockSpec((tb, c_pad), lambda i: (i, 0)),
        compiler_params=pltpu.CompilerParams(
            # Shard the batch-tile axis across TensorCores (v7x megacore).
            dimension_semantics=("parallel",),
        ),
        cost_estimate=cost,
    )(pooled_output, w_t, b2)

    if not trim_classes:
        # Let the consumer (loss/argmax) fuse the slice instead of paying a
        # separate HBM round-trip here.
        return out_padded
    return out_padded[:, :num_classes]


def xavier_uniform(key, shape, dtype=jnp.float32):
    # shape = (out_features, in_features), matching nn.Linear weight.
    fan_out, fan_in = shape
    limit = (6.0 / (fan_in + fan_out)) ** 0.5
    return jax.random.uniform(key, shape, dtype, minval=-limit, maxval=limit)


if __name__ == "__main__":
    hidden_size = 32
    num_classes = 2

    key = jax.random.PRNGKey(0)
    k_x1, k_x2, k_w, k_b = jax.random.split(key, 4)

    weight = xavier_uniform(k_w, (num_classes, hidden_size))   # [C, H], nn.Linear layout
    bias = 0.02 * jax.random.normal(k_b, (num_classes,), dtype=jnp.float32)

    # ---- Test 1: f32 activations + f32 params, tiny batch (single tile) ----
    b1 = 8
    x1 = jax.random.normal(k_x1, (b1, hidden_size), dtype=jnp.float32)
    w_t32, b2_32 = prepare_classifier_params(weight, bias, param_dtype=jnp.float32)
    logits1 = bert_classifier_head(x1, w_t32, b2_32, num_classes)
    jax.block_until_ready(logits1)
    ref1 = x1 @ weight.T + bias
    assert logits1.shape == (b1, num_classes)
    assert jnp.allclose(logits1, ref1, atol=1e-5, rtol=1e-5)

    # ---- Test 2: bf16 activations + bf16 params, >=2 batch tiles ----
    b2_batch = 48
    x2 = jax.random.normal(k_x2, (b2_batch, hidden_size),
                           dtype=jnp.float32).astype(jnp.bfloat16)
    w_tbf, b2_bf = prepare_classifier_params(weight, bias)     # bf16 by default
    logits2 = bert_classifier_head(x2, w_tbf, b2_bf, num_classes)
    jax.block_until_ready(logits2)
    ref2 = (x2.astype(jnp.float32) @ w_tbf[:, :num_classes].astype(jnp.float32)
            + b2_bf[0, :num_classes].astype(jnp.float32))
    assert logits2.shape == (b2_batch, num_classes)
    assert jnp.allclose(logits2.astype(jnp.float32), ref2, atol=2e-2, rtol=2e-2)

    print("KERNEL_OK")
</pallas_src>

<mosaic_0001>
module attributes {stable_mosaic.version = 11 : i64} {
  func.func @_classifier_kernel(%arg0: i32, %arg1: memref<8x32xf32, #tpu.memory_space<vmem>>, %arg2: memref<32x128xf32, #tpu.memory_space<vmem>>, %arg3: memref<1x128xf32, #tpu.memory_space<vmem>>, %arg4: memref<8x128xf32, #tpu.memory_space<vmem>>) attributes {dimension_semantics = [#tpu.dimension_semantics<parallel>], iteration_bounds = array<i64: 1>, scalar_prefetch = 0 : i64, scratch_operands = 0 : i64, tpu.core_type = #tpu.core_type<tc>, window_params = [{transform_indices = @transform_0, window_bounds = array<i64: 8, 32>}, {pipeline_mode = #tpu.pipeline_mode<synchronous>, transform_indices = @transform_1, window_bounds = array<i64: 32, 128>}, {pipeline_mode = #tpu.pipeline_mode<synchronous>, transform_indices = @transform_2, window_bounds = array<i64: 1, 128>}, {transform_indices = @transform_3, window_bounds = array<i64: 8, 128>}]} {
    %c0 = arith.constant 0 : index
    %c0_0 = arith.constant 0 : index
    %0 = vector.load %arg1[%c0, %c0_0] : memref<8x32xf32, #tpu.memory_space<vmem>>, vector<8x32xf32>
    %c0_1 = arith.constant 0 : index
    %c0_2 = arith.constant 0 : index
    %1 = vector.load %arg2[%c0_1, %c0_2] : memref<32x128xf32, #tpu.memory_space<vmem>>, vector<32x128xf32>
    %cst = arith.constant dense<0.000000e+00> : vector<8x128xf32>
    %2 = tpu.matmul %0, %1, %cst {dimension_numbers = #tpu.dot_dimension_numbers<[1], [0], [0], [1], [0, 0, 1, 1], [], []>} : vector<8x32xf32>, vector<32x128xf32>, vector<8x128xf32> -> vector<8x128xf32>
    %c0_3 = arith.constant 0 : index
    %c0_4 = arith.constant 0 : index
    %3 = vector.load %arg3[%c0_3, %c0_4] : memref<1x128xf32, #tpu.memory_space<vmem>>, vector<1x128xf32>
    %4 = vector.broadcast %3 : vector<1x128xf32> to vector<8x128xf32>
    %5 = arith.addf %2, %4 : vector<8x128xf32>
    %c0_5 = arith.constant 0 : index
    %c0_6 = arith.constant 0 : index
    %6 = vector.load %arg4[%c0_5, %c0_6] : memref<8x128xf32, #tpu.memory_space<vmem>>, vector<8x128xf32>
    tpu.vector_store %arg4[%c0_5, %c0_6], %5 {strides = array<i32>} : memref<8x128xf32, #tpu.memory_space<vmem>>, vector<8x128xf32>,
    return
  }
  func.func @transform_0(%arg0: i32) -> (i32, i32) {
    %c0_i32 = arith.constant 0 : i32
    %c0_i32_0 = arith.constant 0 : i32
    return %arg0, %c0_i32 : i32, i32
  }
  func.func @transform_1(%arg0: i32) -> (i32, i32) {
    %c0_i32 = arith.constant 0 : i32
    %c0_i32_0 = arith.constant 0 : i32
    %c0_i32_1 = arith.constant 0 : i32
    return %c0_i32, %c0_i32_0 : i32, i32
  }
  func.func @transform_2(%arg0: i32) -> (i32, i32) {
    %c0_i32 = arith.constant 0 : i32
    %c0_i32_0 = arith.constant 0 : i32
    %c0_i32_1 = arith.constant 0 : i32
    return %c0_i32, %c0_i32_0 : i32, i32
  }
  func.func @transform_3(%arg0: i32) -> (i32, i32) {
    %c0_i32 = arith.constant 0 : i32
    %c0_i32_0 = arith.constant 0 : i32
    return %arg0, %c0_i32 : i32, i32
  }
}

</mosaic_0001>

<bundles_post_ra>
// kernel: tpu_custom_call.1
= control target key start
LH: loop header
LB: loop body
LE: loop exit
PB: predicated region body
PF: predicated region fallthrough
CT: control target
= control target key end

     0   :  { %8 = vsyncpa [#allocation3], 0  ;;  %s219_s0 = inlined_call_operand.hbm [shape: f32[8,32], index: 0, kind: input, shape index: {}]   ;;  %s220_s1 = inlined_call_operand.hbm [shape: f32[32,128], index: 1, kind: input, shape index: {}]   ;;  %s221_s2 = inlined_call_operand.vmem [shape: f32[1,128], index: 2, kind: input, shape index: {}]   ;;  %s222_s3 = inlined_call_operand.hbm [shape: f32[8,128], index: 3, kind: output, shape index: {}]  }
   0x1   :  { %9 = vsyncpa [#allocation6], 0 }
   0x2   :  { %10 = vsyncpa [#allocation4], 0  ;;  %s16_s14 = sshll.u32 %s219_s0, 4  ;;  %s182_s15 = smov [#allocation2]   ;;  %s17_s14 = int_to_ptr.hbm [resolvable:$true] %s16_s14 }
   0x3   :  { %s18_s16 = sshll.u32 %s182_s15, 4  ;;  %s26_s19 = sshll.u32 %s220_s1, 4  ;;  %s19_s16 = int_to_ptr.vmem [resolvable:$true] %s18_s16  ;;  %s27_s19 = int_to_ptr.hbm [resolvable:$true] %s26_s19 }
   0x4   :  { %21 = dma.hbm_to_vmem [thread:$0]  %s17_s14, 128, %s19_s16, [#allocation3]  }
   0x5   :  { %s183_s20 = smov [#allocation5]   ;;  %s184_s22 = smov 128  }
   0x6   :  { %s28_s21 = sshll.u32 %s183_s20, 4  ;;  %s185_s23 = smov 8   ;;  %s29_s21 = int_to_ptr.vmem [resolvable:$true] %s28_s21 }
   0x7   :  { %34 = dma.hbm_to_vmem [thread:$0]  %s27_s19, 512, %s29_s21, [#allocation6], %s184_s22, %s184_s22, %s185_s23  }
   0x8   :  { %176 = dma.done.wait [#allocation3], 128  }
   0x9   :  { %177 = vsyncadd [#allocation3], 4294967168 }
   0xa   :  { %178 = dma.done.wait [#allocation6], 512  }
   0xb   :  { %179 = vsyncadd [#allocation6], 4294966784  ;;  %v49_v0 = vld [vmem:[#allocation5 + $0x18] sm:$0xff]  ;;  %v48_v1 = vld [vmem:[#allocation5 + $0x10] sm:$0xff]  ;;  %vm54_vm0 = vcmask 261120   ;;  %s186_s24 = smov [#allocation7]  }
   0xc   :  { %70 = vmatpush.msra.mxu0 %v49_v0  ;;  %v47_v2 = vld [vmem:[#allocation5 + $0x8] sm:$0xff]  ;;  %v46_v3 = vld [vmem:[#allocation5] sm:$0xff]  ;;  %v45_v4 = vld [vmem:[#allocation2] sm:$0xff]  ;;  %s84_s25 = sshll.u32 %s186_s24, 4  ;;  %s86_s28 = sshll.u32 %s222_s3, 4  ;;  %s85_s25 = int_to_ptr.vmem [resolvable:$true] %s84_s25  ;;  %s87_s28 = int_to_ptr.hbm [resolvable:$true] %s86_s28 }
   0xd   :  { %v103_v5 = vld [vmem:[%s221_s2] ss:$0 sm:$0xff] }
   0xe   :  { %71 = vmatpush.msra.mxu0 %v48_v1 }
  0x10   :  { %72 = vmatpush.msra.mxu0 %v47_v2 }
  0x12   :  { %73 = vmatpush.msra.mxu0 %v46_v3 }
  0x13   :  { %97 = vmatmul.msk.f32.vlgmr.msra.gmra.mxu0 %vm54_vm0, %v45_v4 }
  0x90   :  { %v75_v6 = vpop.f32.mrf.mxu0 }
  0x91   :  { %v76_v7 = vadd.f32 %v103_v5, %v75_v6 }
  0x93   :  { %78 = vst [vmem:[#allocation7] sm:$0xff] %v76_v7 }
  0x94   :  { %89 = dma.vmem_to_hbm [thread:$0]  %s85_s25, 128, %s87_s28, [#allocation4]  }
  0x95   :  { %180 = dma.done.wait [#allocation4], 128  }
  0x96   :  { %181 = vsyncadd [#allocation4], 4294967168 }
  0x97   :  { %94 = vsyncpa [#allocation3], 1 }
  0x98   :  { %95 = vsyncpa [#allocation6], 1 }
  0x99   :  { %96 = vsyncpa [#allocation4], 1 }

</bundles_post_ra>
